<compile_context>
chip_gen: v7x
topology: tpu7x:2x2x1
jax: 0.10.0
libtpu: 0.0.40
codegen_flags: <defaults>
</compile_context>

<pallas_src>
import functools
import math

import jax
import jax.numpy as jnp
from jax.experimental import pallas as pl
from jax.experimental.pallas import tpu as pltpu

EMBED_DIM = 64
R = 4
BN_EPS = 1e-5

# ---- packed-parameter row layout (shared by weight pack and bias pack) ----
_C = EMBED_DIM
_CR = EMBED_DIM // R
ROW_WQ = 0
ROW_WK = _C
ROW_WV = 2 * _C
ROW_WC1 = 3 * _C              # 192  (CR, C)   CAM avg branch conv1 (BN folded)
ROW_WC3 = ROW_WC1 + _CR       # 208  (CR, C)   CAM conv branch conv3 (BN folded)
ROW_WC2 = ROW_WC3 + _CR       # 224  (C, CR)   CAM avg branch conv2 (BN folded)
ROW_WC4 = ROW_WC2 + _C        # 288  (C, CR)   CAM conv branch conv4 (BN folded)
ROW_HEAD = ROW_WC4 + _C       # 352  (1, C)    folded linear1/2/3
PACK_ROWS = ROW_HEAD + 16     # 368  padded to a multiple of 16 (bf16 sublanes)


# ---------------------------------------------------------------------------
# Pallas kernel: QKV attention + CAM + merge + folded head, one batch block
# ---------------------------------------------------------------------------
def diff_attention_kernel(x_ref, w_ref, b_ref, out_ref, *, bblk, seq_len):
    C, CR, L = EMBED_DIM, EMBED_DIM // R, seq_len

    x = x_ref[...]                                  # (C, bblk*L) f32 encoded_x
    xb = x.astype(jnp.bfloat16)

    # Fused q/k/v projection: one (3C, C) x (C, bblk*L) bf16 matmul, f32 acc,
    # f32 biases added post-accumulation.
    qkv = jnp.dot(w_ref[ROW_WQ:ROW_WQ + 3 * C, :], xb,
                  preferred_element_type=jnp.float32)
    qkv = qkv + b_ref[ROW_WQ:ROW_WQ + 3 * C, :]
    q = qkv[0:C, :].astype(jnp.bfloat16)
    k = qkv[C:2 * C, :].astype(jnp.bfloat16)
    v = qkv[2 * C:3 * C, :].astype(jnp.bfloat16)

    # Channel attention per batch element (batch folded along lanes).
    # Reference computes v2 with value_linear_1 too, so d2 == d1 exactly and
    # (d1 + d2) / 2 == d1: the duplicate value path is dropped (no semantic
    # change).  Scores are unscaled, as in the reference.
    att_cols = []
    for i in range(bblk):
        lo = i * L
        qi, ki, vi = q[:, lo:lo + L], k[:, lo:lo + L], v[:, lo:lo + L]
        scores = jax.lax.dot_general(
            qi, ki, (((1,), (1,)), ((), ())),
            preferred_element_type=jnp.float32)            # (C, C)
        scores = jax.nn.softmax(scores, axis=-1)           # f32 softmax
        att_cols.append(jnp.dot(scores.astype(jnp.bfloat16), vi,
                                preferred_element_type=jnp.float32))
    cam_in = jnp.concatenate(att_cols, axis=1)             # (C, bblk*L) f32

    # ---- CAM (eval-mode BatchNorms folded into the 1x1 convs) ----
    # Avg branch on the pooled (C, bblk) columns; broadcast to lanes only at
    # the final add (no (C, L)-broadcast matmuls).
    avg_cols = [jnp.mean(cam_in[:, i * L:(i + 1) * L], axis=1, keepdims=True)
                for i in range(bblk)]
    x_avg = jnp.concatenate(avg_cols, axis=1).astype(jnp.bfloat16)   # (C, bblk)
    a = jnp.dot(w_ref[ROW_WC1:ROW_WC1 + CR, :], x_avg,
                preferred_element_type=jnp.float32)
    a = jnp.maximum(a + b_ref[ROW_WC1:ROW_WC1 + CR, :], 0.0).astype(jnp.bfloat16)
    a = jnp.dot(w_ref[ROW_WC2:ROW_WC2 + C, 0:CR], a,
                preferred_element_type=jnp.float32)
    a = a + b_ref[ROW_WC2:ROW_WC2 + C, :]                             # (C, bblk)
    a_full = jnp.concatenate(
        [jnp.broadcast_to(a[:, i:i + 1], (C, L)) for i in range(bblk)], axis=1)

    # Conv branch is pointwise over lanes, so it runs on the full lane slab.
    cb = cam_in.astype(jnp.bfloat16)
    c = jnp.dot(w_ref[ROW_WC3:ROW_WC3 + CR, :], cb,
                preferred_element_type=jnp.float32)
    c = jnp.maximum(c + b_ref[ROW_WC3:ROW_WC3 + CR, :], 0.0).astype(jnp.bfloat16)
    c = jnp.dot(w_ref[ROW_WC4:ROW_WC4 + C, 0:CR], c,
                preferred_element_type=jnp.float32)
    c = c + b_ref[ROW_WC4:ROW_WC4 + C, :]                             # (C, bblk*L)

    cam_out = jax.nn.sigmoid(a_full + c) * cam_in

    # ---- merge + head ----
    # TAFF kept exactly as the reference writes it: (c*x + (1 - c*x)) / 2.
    prod = cam_out * x
    taff = (prod + (1.0 - prod)) * 0.5

    # linear1/2/3 (no intermediate activations) folded into one (1, C) weight
    # + scalar bias stored at ROW_HEAD.  The 16-row slab keeps the bf16 load
    # tile-aligned; padded rows are zero and their MXU rows are discarded.
    head = jnp.dot(w_ref[ROW_HEAD:ROW_HEAD + 16, :], taff.astype(jnp.bfloat16),
                   preferred_element_type=jnp.float32)
    logits = head[0:1, :] + b_ref[ROW_HEAD:ROW_HEAD + 1, :]
    out_ref[...] = jax.nn.sigmoid(logits)                  # (1, bblk*L)


# ---------------------------------------------------------------------------
# Parameter packing + wrapper
# ---------------------------------------------------------------------------
def _pack_head_params(p):
    C, CR = EMBED_DIM, EMBED_DIM // R

    # Fold the activation-free head MLP: linear3(linear2(linear1(x))).
    w_head = p["wl3"] @ p["wl2"] @ p["wl1"]                              # (1, C)
    b_head = p["wl3"] @ (p["wl2"] @ p["bl1"] + p["bl2"]) + p["bl3"]      # (1, 1)

    w = jnp.zeros((PACK_ROWS, C), jnp.float32)
    w = w.at[ROW_WQ:ROW_WQ + C].set(p["wq"])
    w = w.at[ROW_WK:ROW_WK + C].set(p["wk"])
    w = w.at[ROW_WV:ROW_WV + C].set(p["wv"])
    w = w.at[ROW_WC1:ROW_WC1 + CR].set(p["wc1"])
    w = w.at[ROW_WC3:ROW_WC3 + CR].set(p["wc3"])
    w = w.at[ROW_WC2:ROW_WC2 + C, 0:CR].set(p["wc2"])
    w = w.at[ROW_WC4:ROW_WC4 + C, 0:CR].set(p["wc4"])
    w = w.at[ROW_HEAD:ROW_HEAD + 1].set(w_head)

    b = jnp.zeros((PACK_ROWS, 1), jnp.float32)
    b = b.at[ROW_WQ:ROW_WQ + C].set(p["bq"])
    b = b.at[ROW_WK:ROW_WK + C].set(p["bk"])
    b = b.at[ROW_WV:ROW_WV + C].set(p["bv"])
    b = b.at[ROW_WC1:ROW_WC1 + CR].set(p["bc1"])
    b = b.at[ROW_WC3:ROW_WC3 + CR].set(p["bc3"])
    b = b.at[ROW_WC2:ROW_WC2 + C].set(p["bc2"])
    b = b.at[ROW_WC4:ROW_WC4 + C].set(p["bc4"])
    b = b.at[ROW_HEAD:ROW_HEAD + 1].set(b_head)

    # bf16 weights for the MXU (f32 accumulation in-kernel); f32 biases.
    return w.astype(jnp.bfloat16), b


def _pick_batch_block(batch, seq_len):
    # Fold batch into lanes for MXU fill / unmasked stores, but keep >= 2 grid
    # steps whenever batch >= 2 so the 'parallel' axis covers both v7x
    # TensorCores (per-step fixed cost on v5e/v6e is ~0.35us, negligible here).
    if batch <= 1:
        return 1
    bblk = max(1, min(batch // 2, max(1, 512 // seq_len)))
    while batch % bblk:
        bblk -= 1
    return bblk


def difference_attention_head(encoded_x, head_params, *, batch_block=None):
    B, C, L = encoded_x.shape
    assert C == EMBED_DIM
    if batch_block is None:
        batch_block = _pick_batch_block(B, L)
    assert B % batch_block == 0
    nblocks = B // batch_block
    lanes = batch_block * L

    w_pack, b_pack = _pack_head_params(head_params)

    # Lane-fold the batch: (B, C, L) -> (C, B*L), batch-major along lanes.
    x2d = jnp.transpose(encoded_x, (1, 0, 2)).reshape(C, B * L)

    kernel = functools.partial(diff_attention_kernel,
                               bblk=batch_block, seq_len=L)
    out2d = pl.pallas_call(
        kernel,
        out_shape=jax.ShapeDtypeStruct((1, B * L), jnp.float32),
        grid_spec=pltpu.PrefetchScalarGridSpec(
            num_scalar_prefetch=0,
            grid=(nblocks,),
            in_specs=[
                pl.BlockSpec((C, lanes), lambda i: (0, i)),
                pl.BlockSpec((PACK_ROWS, EMBED_DIM), lambda i: (0, 0)),
                pl.BlockSpec((PACK_ROWS, 1), lambda i: (0, 0)),
            ],
            out_specs=pl.BlockSpec((1, lanes), lambda i: (0, i)),
        ),
        compiler_params=pltpu.CompilerParams(
            dimension_semantics=("parallel",)),
    )(x2d, w_pack, b_pack)

    return out2d.reshape(B, 1, L)


# ---------------------------------------------------------------------------
# Plain-JAX glue: TCN front-end + positional encoding (eval mode)
# ---------------------------------------------------------------------------
def _causal_conv1d(x, w, b, dilation):
    pad = (w.shape[-1] - 1) * dilation
    y = jax.lax.conv_general_dilated(
        x, w, window_strides=(1,), padding=[(pad, 0)],
        rhs_dilation=(dilation,), dimension_numbers=("NCH", "OIH", "NCH"))
    return y + b[None, :, None]


def _conv1x1(x, w, b):
    y = jax.lax.conv_general_dilated(
        x, w, window_strides=(1,), padding=[(0, 0)],
        dimension_numbers=("NCH", "OIH", "NCH"))
    return y + b[None, :, None]


def tcn_forward(x, tcn_params):
    # TODO(synk): TemporalConvNet source was not provided with the module;
    # this follows the standard Bai et al. TCN block (dilated causal conv ->
    # relu -> dilated causal conv -> relu, 1x1 residual downsample, final
    # relu).  weight_norm is absorbed into the weights; dropout is identity.
    out = x
    for i, p in enumerate(tcn_params):
        dilation = 2 ** i
        h = jax.nn.relu(_causal_conv1d(out, p["w1"], p["b1"], dilation))
        h = jax.nn.relu(_causal_conv1d(h, p["w2"], p["b2"], dilation))
        res = _conv1x1(out, p["wd"], p["bd"])
        out = jax.nn.relu(h + res)
    return out


def positional_encoding_table(max_len, d_model):
    position = jnp.arange(max_len, dtype=jnp.float32)[:, None]
    div_term = jnp.exp(jnp.arange(0, d_model, 2, dtype=jnp.float32)
                       * (-math.log(10000.0) / d_model))
    pe = jnp.zeros((max_len, d_model), dtype=jnp.float32)
    pe = pe.at[:, 0::2].set(jnp.sin(position * div_term))
    pe = pe.at[:, 1::2].set(jnp.cos(position * div_term))
    return pe


@jax.jit
def difference_attention_forward(x, tcn_params, head_params):
    tcn_in = jnp.transpose(x, (0, 2, 1))              # (B, 10, L)
    tcn_out = tcn_forward(tcn_in, tcn_params)         # (B, 64, L)
    pos_in = jnp.transpose(tcn_out, (0, 2, 1))        # (B, L, 64)
    B = x.shape[0]
    pe = positional_encoding_table(17520, EMBED_DIM)
    # NB: reproduces the reference quirk — pe is indexed by x.size(0)==batch
    # and broadcast over the sequence axis (dropout is identity in eval).
    encoded_x = pos_in + pe[:B][:, None, :]
    encoded_x = jnp.transpose(encoded_x, (0, 2, 1))   # (B, 64, L)
    return difference_attention_head(encoded_x, head_params)


# ---------------------------------------------------------------------------
# Deterministic parameter construction
# ---------------------------------------------------------------------------
def _fold_bn(w, b, gamma, beta, mean, var, eps=BN_EPS):
    # eval-mode BatchNorm1d folded into the preceding 1x1 conv.
    scale = gamma / jnp.sqrt(var + eps)
    w_f = w * scale[:, None]
    b_f = scale * b + (beta - mean * scale)
    return w_f, b_f[:, None]


def init_params(key):
    keys = iter(jax.random.split(key, 64))

    def nrm(shape, scale=0.1):
        return scale * jax.random.normal(next(keys), shape, dtype=jnp.float32)

    def unif(shape, lo, hi):
        return jax.random.uniform(next(keys), shape, jnp.float32, lo, hi)

    # --- TCN: num_inputs=10, channels [16, 32, 64], kernel_size=3 ---
    tcn = []
    chans = [10, 16, 32, 64]
    for i in range(3):
        cin, cout = chans[i], chans[i + 1]
        tcn.append(dict(
            w1=nrm((cout, cin, 3)), b1=nrm((cout,)),
            w2=nrm((cout, cout, 3)), b2=nrm((cout,)),
            wd=nrm((cout, cin, 1)), bd=nrm((cout,)),
        ))

    C, Cr = EMBED_DIM, EMBED_DIM // R

    def bn(n):  # (gamma, beta, running_mean, running_var)
        return (unif((n,), 0.5, 1.5), nrm((n,)), nrm((n,)), unif((n,), 0.5, 1.5))

    p = {}
    p["wq"], p["bq"] = nrm((C, C)), nrm((C,))[:, None]
    p["wk"], p["bk"] = nrm((C, C)), nrm((C,))[:, None]
    p["wv"], p["bv"] = nrm((C, C)), nrm((C,))[:, None]

    p["wc1"], p["bc1"] = _fold_bn(nrm((Cr, C)), nrm((Cr,)), *bn(Cr))
    p["wc2"], p["bc2"] = _fold_bn(nrm((C, Cr)), nrm((C,)), *bn(C))
    p["wc3"], p["bc3"] = _fold_bn(nrm((Cr, C)), nrm((Cr,)), *bn(Cr))
    p["wc4"], p["bc4"] = _fold_bn(nrm((C, Cr)), nrm((C,)), *bn(C))

    p["wl1"], p["bl1"] = nrm((32, C)), nrm((32,))[:, None]
    p["wl2"], p["bl2"] = nrm((16, 32)), nrm((16,))[:, None]
    p["wl3"], p["bl3"] = nrm((1, 16)), nrm((1,))[:, None]
    return tcn, p


# ---------------------------------------------------------------------------
if __name__ == "__main__":
    key = jax.random.PRNGKey(0)
    k_x, k_p = jax.random.split(key)

    B, L, F = 2, 128, 10                              # (batch, seq, features)
    x = jax.random.normal(k_x, (B, L, F), dtype=jnp.float32)

    tcn_params, head_params = init_params(k_p)

    out = difference_attention_forward(x, tcn_params, head_params)
    out = jax.block_until_ready(out)
    assert out.shape == (B, 1, L) and out.dtype == jnp.float32
    assert bool(jnp.all(jnp.isfinite(out)))
    print("KERNEL_OK")
</pallas_src>

<mosaic_0001>
module attributes {stable_mosaic.version = 11 : i64} {
  func.func @diff_attention_kernel(%arg0: i32, %arg1: memref<64x128xf32, #tpu.memory_space<vmem>>, %arg2: memref<368x64xbf16, #tpu.memory_space<vmem>>, %arg3: memref<368x1xf32, #tpu.memory_space<vmem>>, %arg4: memref<1x128xf32, #tpu.memory_space<vmem>>) attributes {dimension_semantics = [#tpu.dimension_semantics<parallel>], iteration_bounds = array<i64: 2>, scalar_prefetch = 0 : i64, scratch_operands = 0 : i64, tpu.core_type = #tpu.core_type<tc>, window_params = [{transform_indices = @transform_0, window_bounds = array<i64: 64, 128>}, {pipeline_mode = #tpu.pipeline_mode<synchronous>, transform_indices = @transform_1, window_bounds = array<i64: 368, 64>}, {pipeline_mode = #tpu.pipeline_mode<synchronous>, transform_indices = @transform_2, window_bounds = array<i64: 368, 1>}, {transform_indices = @transform_3, window_bounds = array<i64: 1, 128>}]} {
    %c0 = arith.constant 0 : index
    %c0_0 = arith.constant 0 : index
    %0 = vector.load %arg1[%c0, %c0_0] : memref<64x128xf32, #tpu.memory_space<vmem>>, vector<64x128xf32>
    %1 = arith.truncf %0 : vector<64x128xf32> to vector<64x128xbf16>
    %c0_1 = arith.constant 0 : index
    %c0_2 = arith.constant 0 : index
    %2 = vector.load %arg2[%c0_1, %c0_2] : memref<368x64xbf16, #tpu.memory_space<vmem>>, vector<192x64xbf16>
    %cst = arith.constant dense<0.000000e+00> : vector<192x128xf32>
    %3 = tpu.matmul %2, %1, %cst {dimension_numbers = #tpu.dot_dimension_numbers<[1], [0], [0], [1], [0, 0, 1, 1], [], []>} : vector<192x64xbf16>, vector<64x128xbf16>, vector<192x128xf32> -> vector<192x128xf32>
    %c0_3 = arith.constant 0 : index
    %c0_4 = arith.constant 0 : index
    %4 = vector.load %arg3[%c0_3, %c0_4] : memref<368x1xf32, #tpu.memory_space<vmem>>, vector<192x1xf32>
    %5 = vector.broadcast %4 : vector<192x1xf32> to vector<192x128xf32>
    %6 = arith.addf %3, %5 : vector<192x128xf32>
    %7 = vector.extract_strided_slice %6 {offsets = [0, 0], sizes = [64, 128], strides = [1, 1]} : vector<192x128xf32> to vector<64x128xf32>
    %8 = arith.truncf %7 : vector<64x128xf32> to vector<64x128xbf16>
    %9 = vector.extract_strided_slice %6 {offsets = [64, 0], sizes = [64, 128], strides = [1, 1]} : vector<192x128xf32> to vector<64x128xf32>
    %10 = arith.truncf %9 : vector<64x128xf32> to vector<64x128xbf16>
    %11 = vector.extract_strided_slice %6 {offsets = [128, 0], sizes = [64, 128], strides = [1, 1]} : vector<192x128xf32> to vector<64x128xf32>
    %12 = arith.truncf %11 : vector<64x128xf32> to vector<64x128xbf16>
    %cst_5 = arith.constant dense<0.000000e+00> : vector<64x64xf32>
    %13 = tpu.matmul %8, %10, %cst_5 {dimension_numbers = #tpu.dot_dimension_numbers<[1], [1], [0], [0], [0, 0, 1, 0], [], []>} : vector<64x128xbf16>, vector<64x128xbf16>, vector<64x64xf32> -> vector<64x64xf32>
    %cst_6 = arith.constant dense<0xFF800000> : vector<64xf32>
    %14 = vector.multi_reduction <maximumf>, %13, %cst_6 [1] : vector<64x64xf32> to vector<64xf32>
    %cst_7 = arith.constant 0xFF800000 : f32
    %15 = vector.broadcast %cst_7 : f32 to vector<64xf32>
    %16 = arith.maximumf %15, %14 : vector<64xf32>
    %17 = vector.shape_cast %16 : vector<64xf32> to vector<64x1xf32>
    %18 = vector.broadcast %17 : vector<64x1xf32> to vector<64x64xf32>
    %19 = arith.subf %13, %18 : vector<64x64xf32>
    %20 = math.exp %19 : vector<64x64xf32>
    %cst_8 = arith.constant dense<0.000000e+00> : vector<64xf32>
    %21 = vector.multi_reduction <add>, %20, %cst_8 [1] : vector<64x64xf32> to vector<64xf32>
    %22 = vector.shape_cast %21 : vector<64xf32> to vector<64x1xf32>
    %23 = vector.broadcast %22 : vector<64x1xf32> to vector<64x64xf32>
    %24 = arith.divf %20, %23 : vector<64x64xf32>
    %25 = arith.truncf %24 : vector<64x64xf32> to vector<64x64xbf16>
    %cst_9 = arith.constant dense<0.000000e+00> : vector<64x128xf32>
    %26 = tpu.matmul %25, %12, %cst_9 {dimension_numbers = #tpu.dot_dimension_numbers<[1], [0], [0], [1], [0, 0, 1, 1], [], []>} : vector<64x64xbf16>, vector<64x128xbf16>, vector<64x128xf32> -> vector<64x128xf32>
    %cst_10 = arith.constant dense<0.000000e+00> : vector<64xf32>
    %27 = vector.multi_reduction <add>, %26, %cst_10 [1] : vector<64x128xf32> to vector<64xf32>
    %28 = vector.shape_cast %27 : vector<64xf32> to vector<64x1xf32>
    %cst_11 = arith.constant 1.280000e+02 : f32
    %29 = vector.broadcast %cst_11 : f32 to vector<64x1xf32>
    %30 = arith.divf %28, %29 : vector<64x1xf32>
    %31 = arith.truncf %30 : vector<64x1xf32> to vector<64x1xbf16>
    %c192 = arith.constant 192 : index
    %c0_12 = arith.constant 0 : index
    %32 = vector.load %arg2[%c192, %c0_12] : memref<368x64xbf16, #tpu.memory_space<vmem>>, vector<16x64xbf16>
    %cst_13 = arith.constant dense<0.000000e+00> : vector<16x1xf32>
    %33 = tpu.matmul %32, %31, %cst_13 {dimension_numbers = #tpu.dot_dimension_numbers<[1], [0], [0], [1], [0, 0, 1, 1], [], []>} : vector<16x64xbf16>, vector<64x1xbf16>, vector<16x1xf32> -> vector<16x1xf32>
    %c192_14 = arith.constant 192 : index
    %c0_15 = arith.constant 0 : index
    %34 = vector.load %arg3[%c192_14, %c0_15] : memref<368x1xf32, #tpu.memory_space<vmem>>, vector<16x1xf32>
    %35 = arith.addf %33, %34 : vector<16x1xf32>
    %cst_16 = arith.constant 0.000000e+00 : f32
    %36 = vector.broadcast %cst_16 : f32 to vector<16x1xf32>
    %37 = arith.maximumf %35, %36 : vector<16x1xf32>
    %38 = arith.truncf %37 : vector<16x1xf32> to vector<16x1xbf16>
    %c224 = arith.constant 224 : index
    %c0_17 = arith.constant 0 : index
    %39 = vector.load %arg2[%c224, %c0_17] : memref<368x64xbf16, #tpu.memory_space<vmem>>, vector<64x16xbf16>
    %cst_18 = arith.constant dense<0.000000e+00> : vector<64x1xf32>
    %40 = tpu.matmul %39, %38, %cst_18 {dimension_numbers = #tpu.dot_dimension_numbers<[1], [0], [0], [1], [0, 0, 1, 1], [], []>} : vector<64x16xbf16>, vector<16x1xbf16>, vector<64x1xf32> -> vector<64x1xf32>
    %c224_19 = arith.constant 224 : index
    %c0_20 = arith.constant 0 : index
    %41 = vector.load %arg3[%c224_19, %c0_20] : memref<368x1xf32, #tpu.memory_space<vmem>>, vector<64x1xf32>
    %42 = arith.addf %40, %41 : vector<64x1xf32>
    %43 = vector.shape_cast %42 : vector<64x1xf32> to vector<64x1xf32>
    %44 = vector.broadcast %43 : vector<64x1xf32> to vector<64x128xf32>
    %45 = arith.truncf %26 : vector<64x128xf32> to vector<64x128xbf16>
    %c208 = arith.constant 208 : index
    %c0_21 = arith.constant 0 : index
    %46 = vector.load %arg2[%c208, %c0_21] : memref<368x64xbf16, #tpu.memory_space<vmem>>, vector<16x64xbf16>
    %cst_22 = arith.constant dense<0.000000e+00> : vector<16x128xf32>
    %47 = tpu.matmul %46, %45, %cst_22 {dimension_numbers = #tpu.dot_dimension_numbers<[1], [0], [0], [1], [0, 0, 1, 1], [], []>} : vector<16x64xbf16>, vector<64x128xbf16>, vector<16x128xf32> -> vector<16x128xf32>
    %c208_23 = arith.constant 208 : index
    %c0_24 = arith.constant 0 : index
    %48 = vector.load %arg3[%c208_23, %c0_24] : memref<368x1xf32, #tpu.memory_space<vmem>>, vector<16x1xf32>
    %49 = vector.broadcast %48 : vector<16x1xf32> to vector<16x128xf32>
    %50 = arith.addf %47, %49 : vector<16x128xf32>
    %cst_25 = arith.constant 0.000000e+00 : f32
    %51 = vector.broadcast %cst_25 : f32 to vector<16x128xf32>
    %52 = arith.maximumf %50, %51 : vector<16x128xf32>
    %53 = arith.truncf %52 : vector<16x128xf32> to vector<16x128xbf16>
    %c288 = arith.constant 288 : index
    %c0_26 = arith.constant 0 : index
    %54 = vector.load %arg2[%c288, %c0_26] : memref<368x64xbf16, #tpu.memory_space<vmem>>, vector<64x16xbf16>
    %cst_27 = arith.constant dense<0.000000e+00> : vector<64x128xf32>
    %55 = tpu.matmul %54, %53, %cst_27 {dimension_numbers = #tpu.dot_dimension_numbers<[1], [0], [0], [1], [0, 0, 1, 1], [], []>} : vector<64x16xbf16>, vector<16x128xbf16>, vector<64x128xf32> -> vector<64x128xf32>
    %c288_28 = arith.constant 288 : index
    %c0_29 = arith.constant 0 : index
    %56 = vector.load %arg3[%c288_28, %c0_29] : memref<368x1xf32, #tpu.memory_space<vmem>>, vector<64x1xf32>
    %57 = vector.broadcast %56 : vector<64x1xf32> to vector<64x128xf32>
    %58 = arith.addf %55, %57 : vector<64x128xf32>
    %59 = arith.addf %44, %58 : vector<64x128xf32>
    %60 = arith.negf %59 : vector<64x128xf32>
    %61 = math.exp %60 : vector<64x128xf32>
    %cst_30 = arith.constant 1.000000e+00 : f32
    %62 = vector.broadcast %cst_30 : f32 to vector<64x128xf32>
    %63 = arith.addf %62, %61 : vector<64x128xf32>
    %64 = arith.divf %62, %63 : vector<64x128xf32>
    %65 = arith.mulf %64, %26 : vector<64x128xf32>
    %66 = arith.mulf %65, %0 : vector<64x128xf32>
    %cst_31 = arith.constant 1.000000e+00 : f32
    %67 = vector.broadcast %cst_31 : f32 to vector<64x128xf32>
    %68 = arith.subf %67, %66 : vector<64x128xf32>
    %69 = arith.addf %66, %68 : vector<64x128xf32>
    %cst_32 = arith.constant 5.000000e-01 : f32
    %70 = vector.broadcast %cst_32 : f32 to vector<64x128xf32>
    %71 = arith.mulf %69, %70 : vector<64x128xf32>
    %c352 = arith.constant 352 : index
    %c0_33 = arith.constant 0 : index
    %72 = vector.load %arg2[%c352, %c0_33] : memref<368x64xbf16, #tpu.memory_space<vmem>>, vector<16x64xbf16>
    %73 = arith.truncf %71 : vector<64x128xf32> to vector<64x128xbf16>
    %cst_34 = arith.constant dense<0.000000e+00> : vector<16x128xf32>
    %74 = tpu.matmul %72, %73, %cst_34 {dimension_numbers = #tpu.dot_dimension_numbers<[1], [0], [0], [1], [0, 0, 1, 1], [], []>} : vector<16x64xbf16>, vector<64x128xbf16>, vector<16x128xf32> -> vector<16x128xf32>
    %75 = vector.extract_strided_slice %74 {offsets = [0, 0], sizes = [1, 128], strides = [1, 1]} : vector<16x128xf32> to vector<1x128xf32>
    %c352_35 = arith.constant 352 : index
    %c0_36 = arith.constant 0 : index
    %76 = vector.load %arg3[%c352_35, %c0_36] : memref<368x1xf32, #tpu.memory_space<vmem>>, vector<1x1xf32>
    %77 = vector.broadcast %76 : vector<1x1xf32> to vector<1x128xf32>
    %78 = arith.addf %75, %77 : vector<1x128xf32>
    %79 = arith.negf %78 : vector<1x128xf32>
    %80 = math.exp %79 : vector<1x128xf32>
    %cst_37 = arith.constant 1.000000e+00 : f32
    %81 = vector.broadcast %cst_37 : f32 to vector<1x128xf32>
    %82 = arith.addf %81, %80 : vector<1x128xf32>
    %83 = arith.divf %81, %82 : vector<1x128xf32>
    %c0_38 = arith.constant 0 : index
    %c0_39 = arith.constant 0 : index
    %84 = vector.load %arg4[%c0_38, %c0_39] : memref<1x128xf32, #tpu.memory_space<vmem>>, vector<1x128xf32>
    tpu.vector_store %arg4[%c0_38, %c0_39], %83 {strides = array<i32>} : memref<1x128xf32, #tpu.memory_space<vmem>>, vector<1x128xf32>,
    return
  }
  func.func @transform_0(%arg0: i32) -> (i32, i32) {
    %c0_i32 = arith.constant 0 : i32
    %c0_i32_0 = arith.constant 0 : i32
    return %c0_i32, %arg0 : i32, i32
  }
  func.func @transform_1(%arg0: i32) -> (i32, i32) {
    %c0_i32 = arith.constant 0 : i32
    %c0_i32_0 = arith.constant 0 : i32
    %c0_i32_1 = arith.constant 0 : i32
    return %c0_i32, %c0_i32_0 : i32, i32
  }
  func.func @transform_2(%arg0: i32) -> (i32, i32) {
    %c0_i32 = arith.constant 0 : i32
    %c0_i32_0 = arith.constant 0 : i32
    %c0_i32_1 = arith.constant 0 : i32
    return %c0_i32, %c0_i32_0 : i32, i32
  }
  func.func @transform_3(%arg0: i32) -> (i32, i32) {
    %c0_i32 = arith.constant 0 : i32
    %c0_i32_0 = arith.constant 0 : i32
    return %c0_i32, %arg0 : i32, i32
  }
}

</mosaic_0001>

<bundles_post_ra>
// kernel: difference_attention_forward.1
= control target key start
LH: loop header
LB: loop body
LE: loop exit
PB: predicated region body
PF: predicated region fallthrough
CT: control target
= control target key end

     0   :  { %8 = vsyncpa [#allocation4], 0  ;;  %s2538_s0 = inlined_call_operand.vmem [shape: f32[64,256], index: 0, kind: input, shape index: {}]   ;;  %s2539_s1 = inlined_call_operand.vmem [shape: bf16[368,64], index: 1, kind: input, shape index: {}]   ;;  %s2540_s2 = inlined_call_operand.vmem [shape: f32[368,1], index: 2, kind: input, shape index: {}]   ;;  %s2541_s3 = inlined_call_operand.hbm [shape: f32[1,256], index: 3, kind: output, shape index: {}]  }
   0x1   :  { %10 = vsyncpa [#allocation4 + $0x1], 0  ;;  %s2060_s12 = smov 0   ;;  %s2062_s13 = smov 0  }
   0x2   :  { %s2064_s14 = smov 0   ;;  %s2066_s15 = smov 0  }
   0x3 LB: > { %s1582_s16 = sadd.s32 4294967295, %s2034_s15   ;;  %s1583_s17 = sadd.s32 4294967294, %s2034_s15   ;;  %s2034_s15 = sphi %s2066_s15, %s2547_s15   ;;  %s2030_s14 = sphi %s2064_s14, %s2546_s14   ;;  %s2026_s13 = sphi %s2062_s13, %s2545_s13   ;;  %s2022_s12 = sphi %s2060_s12, %s2544_s12  }
   0x4   : > { %s2083_s18 = sadd.s32 1, %s2034_s15   ;;  %s23_s19 = sadd.s32 1, %s2030_s14 }
   0x5   : > { %s20_s20 = ssub.s32 %s2034_s15, %s2083_s18  ;;  %p30_p0 = scmp.ne.s32.totalorder %s2030_s14, %s2026_s13 }
   0x6   : > { %p21_p1 = scmp.eq.s32.totalorder %s20_s20, 0  ;;  %p31_p2 = scmp.eq.s32.totalorder %s2034_s15, 0 }
   0x7   : > { %p102_p3 = scmp.eq.s32.totalorder %s1582_s16, 1  ;;  %p107_p4 = scmp.ne.s32.totalorder %s2026_s13, %s2022_s12 }
   0x8   : > { %s2096_s21 = scalar_select %p21_p1, %s2030_s14, %s23_s19  }
   0x9   : > { %p32_p5 = por %p31_p2, %p30_p0  ;;  %p2098_p6 = por %p102_p3, %p30_p0 }
   0xa   : > { %p108_p7 = scmp.eq.s32.totalorder %s1583_s17, 1  ;;  %p1585_p9 = scmp.ge.s32.totalorder %s2034_s15, 2 }
   0xc   : > { %p2102_p8 = por %p108_p7, %p107_p4  ;;  %130 = sbr.rel (%p1585_p9) target bundleno = 27 (0x1b), region = 24 }
  0x13   : > { %133 = sbr.rel (!%p32_p5) target bundleno = 27 (0x1b), region = 28  ;;  %s135_s24 = sand.u32 (%p32_p5), 1, %s2030_s14  }
  0x14   : > { %s1587_s25 = sshll.u32 (%p32_p5), %s2034_s15, 3  ;;  %s1586_s26 = sshll.u32 (%p32_p5), %s135_s24, 6 }
  0x15   : > { %s139_s29 = scalar_lea.vmem (%p32_p5), %s2538_s0, %s1587_s25  ;;  %s137_s30 = scalar_lea.vmem (%p32_p5), [#allocation2], %s1586_s26 }
  0x16   : > { %v181_v0 = vld [vmem:[%s139_s29] sm:$0xff] (%p32_p5)  ;;  %v183_v1 = vld [vmem:[%s139_s29 + $0x10] sm:$0xff] (%p32_p5) }
  0x17   : > { %v185_v2 = vld [vmem:[%s139_s29 + $0x20] sm:$0xff] (%p32_p5)  ;;  %182 = vst [vmem:[%s137_s30] sm:$0xff] (%p32_p5), %v181_v0  ;;  %184 = vst [vmem:[%s137_s30 + $0x8] sm:$0xff] (%p32_p5), %v183_v1  ;;  %v187_v3 = vld [vmem:[%s139_s29 + $0x30] sm:$0xff] (%p32_p5) }
  0x18   : > { %186 = vst [vmem:[%s137_s30 + $0x10] sm:$0xff] (%p32_p5), %v185_v2  ;;  %v189_v4 = vld [vmem:[%s139_s29 + $0x40] sm:$0xff] (%p32_p5)  ;;  %v191_v5 = vld [vmem:[%s139_s29 + $0x50] sm:$0xff] (%p32_p5)  ;;  %188 = vst [vmem:[%s137_s30 + $0x18] sm:$0xff] (%p32_p5), %v187_v3 }
  0x19   : > { %190 = vst [vmem:[%s137_s30 + $0x20] sm:$0xff] (%p32_p5), %v189_v4  ;;  %192 = vst [vmem:[%s137_s30 + $0x28] sm:$0xff] (%p32_p5), %v191_v5  ;;  %v193_v6 = vld [vmem:[%s139_s29 + $0x60] sm:$0xff] (%p32_p5)  ;;  %v195_v7 = vld [vmem:[%s139_s29 + $0x70] sm:$0xff] (%p32_p5) }
  0x1a   : > { %194 = vst [vmem:[%s137_s30 + $0x30] sm:$0xff] %v193_v6  ;;  %196 = vst [vmem:[%s137_s30 + $0x38] sm:$0xff] %v195_v7 }
  0x1b PF: > { %p1588_p10 = scmp.ge.s32.totalorder %s2034_s15, 1  ;;  %p201_p11 = scmp.lt.s32.totalorder %s2034_s15, 3 }
  0x1d   : > { %p202_p12 = pnand %p1588_p10, %p201_p11 }
  0x1e   : > { %s2117_s4 = sand.u32 (!%p202_p12), 1, %s2026_s13   ;;  %v1873_v8 = vld [vmem:[%s2539_s1] sm:$0xff] (!%p202_p12)   ;;  %vm471_vm0 = vcmask (!%p202_p12), 523264   ;;  %v2036_v14 = vmov (!%p202_p12), 0   ;;  %v277_v23 = vld [vmem:[%s2540_s2 + $0x50] sm:$0xff] (!%p202_p12)  ;;  %v276_v24 = vld [vmem:[%s2540_s2 + $0x48] sm:$0xff] (!%p202_p12) }
  0x1f   : > { %205 = sbr.rel (%p202_p12) target bundleno = 2160 (0x870), region = 66  ;;  %s1589_s7 = sshll.u32 (!%p202_p12), %s2117_s4, 6  ;;  %1717 = vmatprep.mubr.msk.bf16.mxu0 (!%p202_p12), %vm471_vm0, %v1873_v8  ;;  %1871 = vset.pattern.permute.xlu0 (!%p202_p12), %v2036_v14  ;;  %v275_v22 = vld [vmem:[%s2540_s2 + $0x40] sm:$0xff] (!%p202_p12)  ;;  %v278_v25 = vld [vmem:[%s2540_s2 + $0x58] sm:$0xff] (!%p202_p12)  ;;  %v1874_v26 = vld [vmem:[%s2539_s1 + $0x8] sm:$0xff] (!%p202_p12)   ;;  %vm2038_vm1 = vmmov (!%p202_p12), 0  }
  0x20   : > { %s2124_s8 = scalar_lea.vmem (!%p202_p12), [#allocation2], %s1589_s7  ;;  %1872 = vset.pattern.permute.xlu1 (!%p202_p12), %v2036_v14  ;;  %333 = vperm.xlu0 (!%p202_p12), %1871, %v275_v22   ;;  %v1875_v27 = vld [vmem:[%s2539_s1 + $0x10] sm:$0xff] (!%p202_p12)   ;;  %v279_v28 = vld [vmem:[%s2540_s2 + $0x60] sm:$0xff] (!%p202_p12)  ;;  %v280_v29 = vld [vmem:[%s2540_s2 + $0x68] sm:$0xff] (!%p202_p12)  ;;  %vm1004_vm2 = vcmask (!%p202_p12), 130048   ;;  %s1649_s20 = sshll.u32 (!%p202_p12), %s1582_s16, 4 }
  0x21   : > { %v231_v9 = vld [vmem:[%s2124_s8] sm:$0xff] (!%p202_p12)  ;;  %v232_v10 = vld [vmem:[%s2124_s8 + $0x8] sm:$0xff] (!%p202_p12)  ;;  %v233_v11 = vld [vmem:[%s2124_s8 + $0x10] sm:$0xff] (!%p202_p12)  ;;  %343 = vperm.xlu1 (!%p202_p12), %1872, %v277_v23   ;;  %s229_s24 = scalar_lea.vmem (!%p202_p12), [#allocation3], %s2117_s4  ;;  %s2494_s28 = scalar_lea.hbm (!%p202_p12), %s2541_s3, %s1649_s20 }
  0x22   : > { %v239_v12 = vpack.c.bf16 (!%p202_p12), %v232_v10, %v231_v9  ;;  %v234_v13 = vld [vmem:[%s2124_s8 + $0x18] sm:$0xff] (!%p202_p12)  ;;  %v235_v16 = vld [vmem:[%s2124_s8 + $0x20] sm:$0xff] (!%p202_p12)  ;;  %v236_v17 = vld [vmem:[%s2124_s8 + $0x28] sm:$0xff] (!%p202_p12)  ;;  %s1522_s25 = sshll.u32 (!%p202_p12), %s229_s24, 4  ;;  %s1510_s29 = scalar_lea.sflag (!%p202_p12), [#allocation4], %s2117_s4  ;;  %s2496_s25 = int_to_ptr.vmem [resolvable:$true] %s1522_s25 }
  0x23   : > { %v240_v15 = vpack.c.bf16 (!%p202_p12), %v234_v13, %v233_v11  ;;  %v241_v18 = vpack.c.bf16 (!%p202_p12), %v236_v17, %v235_v16  ;;  %v237_v19 = vld [vmem:[%s2124_s8 + $0x30] sm:$0xff] (!%p202_p12)  ;;  %v238_v20 = vld [vmem:[%s2124_s8 + $0x38] sm:$0xff] (!%p202_p12)  ;;  %v1877_v33 = vld [vmem:[%s2539_s1 + $0x20] sm:$0xff] (!%p202_p12)   ;;  %s1972_s30 = scalar_lea.vmem (!%p202_p12), %s2496_s25, 16  ;;  %s2039_s16 = smov (!%p202_p12), [#allocation3]  }
  0x24   : > { %1709 = vmatprep.subr.bf16.mxu0 (!%p202_p12), %v239_v12  ;;  %v242_v21 = vpack.c.bf16 (!%p202_p12), %v238_v20, %v237_v19  ;;  %338 = vperm.xlu0 (!%p202_p12), %1871, %v276_v24   ;;  %v281_v30 = vld [vmem:[%s2540_s2 + $0x70] sm:$0xff] (!%p202_p12)  ;;  %v282_v31 = vld [vmem:[%s2540_s2 + $0x78] sm:$0xff] (!%p202_p12)  ;;  %v267_v34 = vld [vmem:[%s2540_s2] sm:$0xff] (!%p202_p12)  ;;  %p1973_p13 = scmp.ne.s32.totalorder (!%p202_p12), %s2496_s25, %s1972_s30  ;;  %s1976_s5 = sshll.u32 (!%p202_p12), %s2039_s16, 4  ;;  %s1977_s5 = int_to_ptr.vmem [resolvable:$false] %s1976_s5 }
  0x25   : > { %1710 = vmatpush3.bf16.msra.mxu0 (!%p202_p12), %v239_v12  ;;  %348 = vperm.xlu1 (!%p202_p12), %1872, %v278_v25   ;;  %v1876_v32 = vld [vmem:[%s2539_s1 + $0x18] sm:$0xff] (!%p202_p12)   ;;  %v268_v35 = vld [vmem:[%s2540_s2 + $0x8] sm:$0xff] (!%p202_p12)  ;;  %v269_v36 = vld [vmem:[%s2540_s2 + $0x10] sm:$0xff] (!%p202_p12)  ;;  %s1978_s6 = scalar_lea.vmem (!%p202_p12), %s1977_s5, 32  ;;  %p1979_p2 = scmp.lt.s32.totalorder (!%p202_p12), %s2496_s25, %s1977_s5 }
  0x26   : > { %1711 = vmatprep.subr.bf16.mxu0 %v240_v15  ;;  %v270_v37 = vld [vmem:[%s2540_s2 + $0x18] sm:$0xff]  ;;  %v1878_v38 = vld [vmem:[%s2539_s1 + $0x28] sm:$0xff]   ;;  %v1879_v39 = vld [vmem:[%s2539_s1 + $0x30] sm:$0xff]   ;;  %p1974_p0 = pnand %p1973_p13, %p2098_p6  ;;  %p1980_p3 = scmp.lt.s32.totalorder %s1978_s6, %s1972_s30 }
  0x27   : > { %v271_v40 = vld [vmem:[%s2540_s2 + $0x20] sm:$0xff]  ;;  %v272_v41 = vld [vmem:[%s2540_s2 + $0x28] sm:$0xff]  ;;  %v273_v42 = vld [vmem:[%s2540_s2 + $0x30] sm:$0xff] }
  0x28   : > { %353 = vperm.xlu0 %1871, %v279_v28   ;;  %v274_v43 = vld [vmem:[%s2540_s2 + $0x38] sm:$0xff]  ;;  %v1881_v45 = vld [vmem:[%s2539_s1 + $0x40] sm:$0xff]   ;;  %v1882_v47 = vld [vmem:[%s2539_s1 + $0x48] sm:$0xff]   ;;  %p1975_p1 = pneg %p1974_p0  ;;  %p1981_p4 = por %p1980_p3, %p1979_p2 }
  0x29   : > { %1712 = vmatpush3.bf16.msra.mxu0 %v240_v15  ;;  %358 = vperm.xlu1 %1872, %v280_v29   ;;  %v1880_v44 = vld [vmem:[%s2539_s1 + $0x38] sm:$0xff]   ;;  %v283_v46 = vld [vmem:[%s2540_s2 + $0x80] sm:$0xff]  ;;  %v1883_v48 = vld [vmem:[%s2539_s1 + $0x50] sm:$0xff]  }
  0x2a   : > { %1713 = vmatprep.subr.bf16.mxu0 %v241_v18  ;;  %v1884_v49 = vld [vmem:[%s2539_s1 + $0x58] sm:$0xff]   ;;  %p1982_p5 = pnand %p1981_p4, %p1975_p1 }
  0x2c   : > { %363 = vperm.xlu0 %1871, %v281_v30  }
  0x2d   : > { %1714 = vmatpush3.bf16.msra.mxu0 %v241_v18  ;;  %368 = vperm.xlu1 %1872, %v282_v31  }
  0x2e   : > { %1715 = vmatprep.subr.bf16.mxu0 %v242_v21 }
  0x30   : > { %293 = vperm.xlu0 %1871, %v267_v34  }
  0x31   : > { %1716 = vmatpush3.bf16.msra.mxu0 %v242_v21  ;;  %298 = vperm.xlu1 %1872, %v268_v35  }
  0x34   : > { %1718 = vmatmul.mubr.msk.bf16.vlgmr.msra.gmra.mrb[0].mxu0 %vm471_vm0, %v1874_v26  ;;  %303 = vperm.xlu0 %1871, %v269_v36  }
  0x35   : > { %1721 = vmatprep.mubr.msk.bf16.mxu0 %vm471_vm0, %v1875_v27  ;;  %308 = vperm.xlu1 %1872, %v270_v37  }
  0x38   : > { %313 = vperm.xlu0 %1871, %v271_v40  }
  0x39   : > { %318 = vperm.xlu1 %1872, %v272_v41  }
  0x3c   : > { %1722 = vmatmul.mubr.msk.bf16.gmra.mrb[4].mxu0 %vm471_vm0, %v1876_v32  ;;  %323 = vperm.xlu0 %1871, %v273_v42  }
  0x3d   : > { %1725 = vmatprep.mubr.msk.bf16.mxu0 %vm471_vm0, %v1877_v33  ;;  %328 = vperm.xlu1 %1872, %v274_v43  }
  0x41   : > { %373 = vperm.xlu1 %1872, %v283_v46  }
  0x44   : > { %1726 = vmatmul.mubr.msk.bf16.gmra.mrb[8].mxu0 %vm471_vm0, %v1878_v38 }
  0x45   : > { %1729 = vmatprep.mubr.msk.bf16.mxu0 %vm471_vm0, %v1879_v39 }
  0x4c   : > { %1730 = vmatmul.mubr.msk.bf16.gmra.mrb[12].mxu0 %vm471_vm0, %v1880_v44 }
  0x4d   : > { %1733 = vmatprep.mubr.msk.bf16.mxu0 %vm471_vm0, %v1881_v45 }
  0x54   : > { %1734 = vmatmul.mubr.msk.bf16.gmra.mrb[16].mxu0 %vm471_vm0, %v1882_v47 }
  0x55   : > { %1737 = vmatprep.mubr.msk.bf16.mxu0 %vm471_vm0, %v1883_v48 }
  0x5c   : > { %1738 = vmatmul.mubr.msk.bf16.gmra.mrb[20].mxu0 %vm471_vm0, %v1884_v49 }
  0x9f   : > { %v334_v50 = vpop.permute.xlu0 %333 }
  0xa0   : > { %v344_v51 = vpop.permute.xlu1 %343 }
  0xa3   : > { %v339_v52 = vpop.permute.xlu0 %338 }
  0xa4   : > { %v349_v53 = vpop.permute.xlu1 %348 }
  0xa7   : > { %v354_v54 = vpop.permute.xlu0 %353 }
  0xa8   : > { %v359_v55 = vpop.permute.xlu1 %358 }
  0xab   : > { %v364_v56 = vpop.permute.xlu0 %363 }
  0xac   : > { %v369_v57 = vpop.permute.xlu1 %368 }
  0xaf   : > { %v294_v58 = vpop.permute.xlu0 %293 }
  0xb0   : > { %v299_v59 = vpop.permute.xlu1 %298 }
  0xb3   : > { %v304_v60 = vpop.permute.xlu0 %303 }
  0xb4   : > { %v309_v61 = vpop.permute.xlu1 %308 }
  0xb7   : > { %v314_v0 = vpop.permute.xlu0 %313 }
  0xb8   : > { %v319_v2 = vpop.permute.xlu1 %318 }
  0xbb   : > { %v324_v10 = vpop.permute.xlu0 %323 }
  0xbc   : > { %v329_v12 = vpop.permute.xlu1 %328 }
 0x107   : > { %v1719_v62 = vpop.f32.mrb[0].mxu0 }
 0x108   : > { %v542_v63 = vpop.f32.mrb[1].mxu0  ;;  %v551_v3 = vadd.f32 %v1719_v62, %v304_v60  ;;  %v285_v60 = vld [vmem:[%s2540_s2 + $0x90] sm:$0xff]  ;;  %v287_v62 = vld [vmem:[%s2540_s2 + $0xa0] sm:$0xff] }
 0x109   : > { %v1720_v1 = vpop.f32.mrb[2].mxu0  ;;  %v543_v6 = vadd.f32 %v542_v63, %v294_v58 }
 0x10a   : > { %v554_v4 = vadd.f32 %v1720_v1, %v309_v61  ;;  %v545_v5 = vpop.f32.mrb[3].mxu0  ;;  %v286_v61 = vld [vmem:[%s2540_s2 + $0x98] sm:$0xff] }
 0x10b   : > { %v546_v7 = vadd.f32 %v545_v5, %v299_v59 }
 0x10c   : > { %v638_v8 = vpack.c.bf16 %v554_v4, %v551_v3  ;;  %v374_v4 = vpop.permute.xlu1 %373 }
 0x10d   : > { %v637_v9 = vpack.c.bf16 %v546_v7, %v543_v6 }
 0x10f   : > { %v1723_v11 = vpop.f32.mrb[4].mxu0  ;;  %1749 = vmatprep.mubr.bf16.mxu1 %v637_v9 }
 0x110   : > { %v558_v13 = vpop.f32.mrb[5].mxu0  ;;  %v567_v15 = vadd.f32 %v1723_v11, %v324_v10 }
 0x111   : > { %v1724_v14 = vpop.f32.mrb[6].mxu0  ;;  %v559_v18 = vadd.f32 %v558_v13, %v314_v0  ;;  %v284_v0 = vld [vmem:[%s2540_s2 + $0x88] sm:$0xff] }
 0x112   : > { %v570_v16 = vadd.f32 %v1724_v14, %v329_v12  ;;  %v561_v17 = vpop.f32.mrb[7].mxu0 }
 0x113   : > { %v562_v19 = vadd.f32 %v561_v17, %v319_v2 }
 0x114   : > { %v640_v20 = vpack.c.bf16 %v570_v16, %v567_v15 }
 0x115   : > { %v639_v21 = vpack.c.bf16 %v562_v19, %v559_v18 }
 0x117   : > { %v1727_v22 = vpop.f32.mrb[8].mxu0 }
 0x118   : > { %v574_v23 = vpop.f32.mrb[9].mxu0  ;;  %v583_v25 = vadd.f32 %v1727_v22, %v344_v51 }
 0x119   : > { %v1728_v24 = vpop.f32.mrb[10].mxu0  ;;  %v575_v28 = vadd.f32 %v574_v23, %v334_v50 }
 0x11a   : > { %v586_v26 = vadd.f32 %v1728_v24, %v349_v53  ;;  %v577_v27 = vpop.f32.mrb[11].mxu0 }
 0x11b   : > { %v578_v29 = vadd.f32 %v577_v27, %v339_v52 }
 0x11c   : > { %v642_v30 = vpack.c.bf16 %v586_v26, %v583_v25 }
 0x11d   : > { %v641_v31 = vpack.c.bf16 %v578_v29, %v575_v28 }
 0x11f   : > { %v1731_v32 = vpop.f32.mrb[12].mxu0  ;;  %1741 = vmatprep.subr.bf16.mxu1 %v641_v31 }
 0x120   : > { %v590_v33 = vpop.f32.mrb[13].mxu0  ;;  %1742 = vmatpush3.bf16.xpose.msra.mxu1 %v641_v31  ;;  %v599_v35 = vadd.f32 %v1731_v32, %v364_v56 }
 0x121   : > { %v1732_v34 = vpop.f32.mrb[14].mxu0  ;;  %1743 = vmatprep.subr.bf16.mxu1 %v642_v30  ;;  %v591_v38 = vadd.f32 %v590_v33, %v354_v54 }
 0x122   : > { %v602_v36 = vadd.f32 %v1732_v34, %v369_v57  ;;  %v593_v37 = vpop.f32.mrb[15].mxu0 }
 0x123   : > { %v594_v39 = vadd.f32 %v593_v37, %v359_v55 }
 0x124   : > { %v644_v40 = vpack.c.bf16 %v602_v36, %v599_v35 }
 0x125   : > { %v643_v41 = vpack.c.bf16 %v594_v39, %v591_v38 }
 0x127   : > { %v2229_v42 = vpop.f32.mrb[16].mxu0 }
 0x128   : > { %v2231_v43 = vpop.f32.mrb[17].mxu0  ;;  %1744 = vmatpush3.bf16.xpose.msra.mxu1 %v642_v30 }
 0x129   : > { %1745 = vmatprep.subr.bf16.mxu1 %v643_v41  ;;  %v1736_v63 = vpop.f32.mrb[18].mxu0 }
 0x12a   : > { %v609_v1 = vpop.f32.mrb[19].mxu0 }
 0x12f   : > { %v2256_v2 = vpop.f32.mrb[20].mxu0 }
 0x130   : > { %1746 = vmatpush3.bf16.xpose.msra.mxu1 %v643_v41  ;;  %v2258_v3 = vpop.f32.mrb[21].mxu0 }
 0x131   : > { %1747 = vmatprep.subr.bf16.mxu1 %v644_v40 }
 0x138   : > { %1748 = vmatpush3.bf16.xpose.msra.mxu1 %v644_v40  ;;  %v607_v40 = vadd.f32 %v2231_v43, %v374_v4  ;;  %v289_v43 = vld [vmem:[%s2540_s2 + $0xb0] sm:$0xff] }
 0x13f   : > { %1750 = vmatmul.mubr.bf16.vlgmr.msra.gmra.mrb[0].mxu1 %v638_v8 }
 0x140   : > { %1753 = vmatprep.mubr.bf16.mxu1 %v639_v21 }
 0x147   : > { %1754 = vmatmul.mubr.bf16.gmra.mrb[4].mxu1 %v640_v20 }
 0x212   : > { %v1751_v44 = vpop.f32.mrb[0].mxu1 }
 0x213   : > { %v683_v45 = vpop.f32.mrb[1].mxu1  ;;  %v720_v46 = vsel %vm471_vm0, %v1751_v44, -inf }
 0x214   : > { %721 = vmax.xlane.f32.xlu0 %v720_v46  ;;  %v1752_v47 = vpop.f32.mrb[2].mxu1  ;;  %v714_v50 = vsel %vm471_vm0, %v683_v45, -inf }
 0x215   : > { %v686_v48 = vpop.f32.mrb[3].mxu1  ;;  %v723_v53 = vsel %vm471_vm0, %v1752_v47, -inf }
 0x216   : > { %v717_v49 = vsel %vm471_vm0, %v686_v48, -inf }
 0x217   : > { %718 = vmax.xlane.f32.xlu1 %v717_v49 }
 0x218   : > { %715 = vmax.xlane.f32.xlu0 %v714_v50 }
 0x21a   : > { %v1755_v51 = vpop.f32.mrb[4].mxu1 }
 0x21b   : > { %v699_v52 = vpop.f32.mrb[5].mxu1  ;;  %v732_v54 = vsel %vm471_vm0, %v1755_v51, -inf }
 0x21c   : > { %724 = vmax.xlane.f32.xlu0 %v723_v53  ;;  %733 = vmax.xlane.f32.xlu1 %v732_v54  ;;  %v1756_v55 = vpop.f32.mrb[6].mxu1  ;;  %v726_v57 = vsel %vm471_vm0, %v699_v52, -inf  ;;  %v1740_v53 = vpop.f32.mrb[22].mxu0 }
 0x21d   : > { %v2238_v56 = vpop.f32.mrb[7].mxu1  ;;  %v735_v58 = vsel %vm471_vm0, %v1756_v55, -inf  ;;  %v625_v54 = vpop.f32.mrb[23].mxu0 }
 0x21e   : > { %v729_v59 = vsel %vm471_vm0, %v2238_v56, -inf }
 0x220   : > { %727 = vmax.xlane.f32.xlu1 %v726_v57  ;;  %736 = vmax.xlane.f32.xlu0 %v735_v58 }
 0x224   : > { %730 = vmax.xlane.f32.xlu0 %v729_v59  ;;  %v290_v59 = vld [vmem:[%s2540_s2 + $0xb8] sm:$0xff] }
 0x231   : > { %383 = vperm.xlu1 %1872, %v285_v60  }
 0x235   : > { %388 = vperm.xlu1 %1872, %v286_v61  }
 0x239   : > { %393 = vperm.xlu1 %1872, %v287_v62  }
 0x23a   : > { %378 = vperm.xlu0 %1871, %v284_v0  }
 0x2a1   : > { %v722_v5 = vpop.xlane.xlu0 %721 }
 0x2a2   : > { %v740_v6 = vsub.f32 %v1751_v44, %v722_v5 }
 0x2a4   : > { %v750_v7 = vmul.f32 1.442695, %v740_v6  ;;  %v719_v8 = vpop.xlane.xlu1 %718 }
 0x2a5   : > { %v716_v9 = vpop.xlane.xlu0 %715  ;;  %v739_v11 = vsub.f32 %v686_v48, %v719_v8 }
 0x2a6   : > { %1896 = vpow2.f32 %v750_v7  ;;  %v738_v10 = vsub.f32 %v683_v45, %v716_v9 }
 0x2a7   : > { %v748_v16 = vmul.f32 1.442695, %v739_v11 }
 0x2a8   : > { %v746_v12 = vmul.f32 1.442695, %v738_v10 }
 0x2a9   : > { %v725_v13 = vpop.xlane.xlu0 %724  ;;  %v734_v14 = vpop.xlane.xlu1 %733 }
 0x2aa   : > { %1898 = vpow2.f32 %v746_v12  ;;  %v741_v15 = vsub.f32 %v1752_v47, %v725_v13  ;;  %v744_v18 = vsub.f32 %v1755_v51, %v734_v14 }
 0x2ac   : > { %v752_v17 = vmul.f32 1.442695, %v741_v15  ;;  %v758_v22 = vmul.f32 1.442695, %v744_v18 }
 0x2ad   : > { %v728_v19 = vpop.xlane.xlu1 %727  ;;  %v737_v20 = vpop.xlane.xlu0 %736 }
 0x2ae   : > { %1900 = vpow2.f32 %v752_v17  ;;  %v742_v23 = vsub.f32 %v699_v52, %v728_v19  ;;  %v745_v28 = vsub.f32 %v1756_v55, %v737_v20  ;;  %v288_v55 = vld [vmem:[%s2540_s2 + $0xa8] sm:$0xff] }
 0x2af   : > { %1902 = vpow2.f32 %v748_v16 }
 0x2b0   : > { %v2260_v21 = vpop.eup %1896  ;;  %1904 = vpow2.f32 %v758_v22  ;;  %v754_v27 = vmul.f32 1.442695, %v742_v23  ;;  %v760_v35 = vmul.f32 1.442695, %v745_v28 }
 0x2b1   : > { %v384_v24 = vpop.permute.xlu1 %383  ;;  %v768_v25 = vsel %vm471_vm0, %v2260_v21, 0.0  ;;  %v731_v29 = vpop.xlane.xlu0 %730 }
 0x2b2   : > { %769 = vadd.xlane.f32.xlu1 %v768_v25  ;;  %v615_v32 = vadd.f32 %v2229_v42, %v384_v24  ;;  %1906 = vpow2.f32 %v754_v27  ;;  %v743_v51 = vsub.f32 %v2238_v56, %v731_v29 }
 0x2b3   : > { %1908 = vpow2.f32 %v760_v35 }
 0x2b4   : > { %v1899_v26 = vpop.eup %1898  ;;  %v756_v52 = vmul.f32 1.442695, %v743_v51  ;;  %v1202_v51 = vld [vmem:[%s2540_s2 + $0x130] sm:$0xff] }
 0x2b5   : > { %v389_v30 = vpop.permute.xlu1 %388  ;;  %v762_v31 = vsel %vm471_vm0, %v1899_v26, 0.0 }
 0x2b6   : > { %v618_v33 = vadd.f32 %v1736_v63, %v389_v30  ;;  %763 = vadd.xlane.f32.xlu1 %v762_v31  ;;  %1910 = vpow2.f32 %v756_v52  ;;  %v1205_v52 = vld [vmem:[%s2540_s2 + $0x148] sm:$0xff] }
 0x2b8   : > { %v2266_v34 = vpop.eup %1900  ;;  %v646_v36 = vpack.c.bf16 %v618_v33, %v615_v32 }
 0x2b9   : > { %v379_v37 = vpop.permute.xlu0 %378  ;;  %v771_v38 = vsel %vm471_vm0, %v2266_v34, 0.0  ;;  %v1903_v39 = vpop.eup %1902 }
 0x2ba   : > { %v610_v41 = vadd.f32 %v609_v1, %v379_v37  ;;  %772 = vadd.xlane.f32.xlu0 %v771_v38  ;;  %v765_v42 = vsel %vm471_vm0, %v1903_v39, 0.0  ;;  %v2272_v45 = vpop.eup %1904  ;;  %v394_v60 = vpop.permute.xlu1 %393 }
 0x2bb   : > { %v780_v46 = vsel %vm471_vm0, %v2272_v45, 0.0  ;;  %v623_v11 = vadd.f32 %v2258_v3, %v394_v60 }
 0x2bc   : > { %v645_v44 = vpack.c.bf16 %v610_v41, %v607_v40  ;;  %v2276_v47 = vpop.eup %1906 }
 0x2bd   : > { %v774_v48 = vsel %vm471_vm0, %v2276_v47, 0.0  ;;  %v2283_v49 = vpop.eup %1908 }
 0x2be   : > { %766 = vadd.xlane.f32.xlu0 %v765_v42  ;;  %1757 = vmatprep.subr.bf16.mxu1 %v645_v44  ;;  %v783_v50 = vsel %vm471_vm0, %v2283_v49, 0.0 }
 0x2bf   : > { %1758 = vmatpush3.bf16.msra.mxu1 %v645_v44 }
 0x2c0   : > { %1759 = vmatprep.subr.bf16.mxu1 %v646_v36  ;;  %v1911_v57 = vpop.eup %1910 }
 0x2c1   : > { %v777_v58 = vsel %vm471_vm0, %v1911_v57, 0.0 }
 0x2c2   : > { %781 = vadd.xlane.f32.xlu0 %v780_v46  ;;  %v2037_v46 = vmov 0.0  }
 0x2c3   : > { %1760 = vmatpush3.bf16.msra.mxu1 %v646_v36  ;;  %1773 = vmatprep.subr.bf16.mxu0 %v2037_v46 }
 0x2c4   : > { %1781 = vmatprep.mubr.msk.bf16.mxu0 %vm2038_vm1, %v2037_v46 }
 0x2c6   : > { %775 = vadd.xlane.f32.xlu0 %v774_v48  ;;  %v1201_v48 = vld [vmem:[%s2540_s2 + $0x128] sm:$0xff] }
 0x2c7   : > { %403 = vperm.xlu1 %1872, %v289_v43   ;;  %v1200_v43 = vld [vmem:[%s2540_s2 + $0x120] sm:$0xff] }
 0x2ca   : > { %784 = vadd.xlane.f32.xlu0 %v783_v50  ;;  %v1203_v50 = vld [vmem:[%s2540_s2 + $0x138] sm:$0xff] }
 0x2e0   : > { %398 = vperm.xlu0 %1871, %v288_v55  }
 0x2eb   : > { %778 = vadd.xlane.f32.xlu1 %v777_v58 }
 0x2fc   : > { %408 = vperm.xlu1 %1872, %v290_v59  }
 0x33f   : > { %v770_v56 = vpop.xlane.xlu1 %769 }
 0x343   : > { %v764_v61 = vpop.xlane.xlu1 %763 }
 0x344   : > { %1912 = vrcp.f32 %v764_v61 }
 0x347   : > { %v773_v62 = vpop.xlane.xlu0 %772  ;;  %v404_v14 = vpop.permute.xlu1 %403 }
 0x348   : > { %v631_v18 = vadd.f32 %v2256_v2, %v404_v14  ;;  %v1887_v14 = vld [vmem:[%s2539_s1 + $0x70] sm:$0xff]  }
 0x34b   : > { %v767_v63 = vpop.xlane.xlu0 %766 }
 0x34c   : > { %1914 = vrcp.f32 %v767_v63 }
 0x34d   : > { %1916 = vrcp.f32 %v773_v62 }
 0x34e   : > { %v1913_v1 = vpop.eup %1912  ;;  %1918 = vrcp.f32 %v770_v56 }
 0x34f   : > { %v782_v0 = vpop.xlane.xlu0 %781  ;;  %v787_v6 = vmul.f32 %v1913_v1, %v1899_v26 }
 0x353   : > { %v776_v4 = vpop.xlane.xlu0 %775 }
 0x354   : > { %1920 = vrcp.f32 %v776_v4 }
 0x356   : > { %v1915_v5 = vpop.eup %1914 }
 0x357   : > { %v789_v7 = vmul.f32 %v1915_v5, %v1903_v39  ;;  %v785_v9 = vpop.xlane.xlu0 %784  ;;  %v1917_v16 = vpop.eup %1916 }
 0x358   : > { %v1919_v20 = vpop.eup %1918  ;;  %v793_v3 = vmul.f32 %v1917_v16, %v2266_v34 }
 0x359   : > { %v802_v8 = vpack.c.bf16 %v789_v7, %v787_v6  ;;  %v791_v24 = vmul.f32 %v1919_v20, %v2260_v21 }
 0x35b   : > { %1765 = vmatprep.mubr.msk.bf16.mxu1 %vm471_vm0, %v802_v8  ;;  %v803_v26 = vpack.c.bf16 %v793_v3, %v791_v24 }
 0x35e   : > { %v1921_v23 = vpop.eup %1920 }
 0x35f   : > { %v399_v10 = vpop.permute.xlu0 %398  ;;  %v795_v28 = vmul.f32 %v1921_v23, %v2276_v47  ;;  %v1128_v47 = vld [vmem:[%s2540_s2 + $0xd0] sm:$0xff] }
 0x360   : > { %v626_v12 = vadd.f32 %v625_v54, %v399_v10 }
 0x362   : > { %v647_v13 = vpack.c.bf16 %v626_v12, %v623_v11  ;;  %v1885_v12 = vld [vmem:[%s2539_s1 + $0x60] sm:$0xff]  }
 0x364   : > { %1761 = vmatprep.subr.bf16.mxu1 %v647_v13 }
 0x365   : > { %1762 = vmatpush3.bf16.msra.mxu1 %v647_v13  ;;  %v1886_v13 = vld [vmem:[%s2539_s1 + $0x68] sm:$0xff]  }
 0x378   : > { %v779_v15 = vpop.xlane.xlu1 %778 }
 0x379   : > { %1922 = vrcp.f32 %v779_v15  ;;  %v914_v15 = vld [vmem:[%s2540_s2 + $0xc0] sm:$0xff] }
 0x37a   : > { %1924 = vrcp.f32 %v785_v9 }
 0x37b   : > { %1926 = vrcp.f32 %v782_v0 }
 0x37c   : > { %v409_v17 = vpop.permute.xlu1 %408 }
 0x37d   : > { %v634_v19 = vadd.f32 %v1740_v53, %v409_v17  ;;  %v1204_v53 = vld [vmem:[%s2540_s2 + $0x140] sm:$0xff]  ;;  %v915_v17 = vld [vmem:[%s2540_s2 + $0xc8] sm:$0xff] }
 0x37f   : > { %v648_v22 = vpack.c.bf16 %v634_v19, %v631_v18 }
 0x381   : > { %1763 = vmatprep.subr.bf16.mxu1 %v648_v22 }
 0x382   : > { %1764 = vmatpush3.bf16.msra.mxu1 %v648_v22 }
 0x383   : > { %v1923_v25 = vpop.eup %1922 }
 0x384   : > { %v1925_v27 = vpop.eup %1924  ;;  %v797_v29 = vmul.f32 %v1923_v25, %v1911_v57 }
 0x385   : > { %1766 = vmatmul.mubr.msk.bf16.vlgmr.msra.gmra.mrb[8].mxu1 %vm471_vm0, %v803_v26  ;;  %v1927_v30 = vpop.eup %1926  ;;  %v801_v31 = vmul.f32 %v1925_v27, %v2283_v49  ;;  %v1129_v49 = vld [vmem:[%s2540_s2 + $0xd8] sm:$0xff]  ;;  %v1889_v27 = vld [vmem:[%s2539_s1 + $0x80] sm:$0xff]  }
 0x386   : > { %v804_v2 = vpack.c.bf16 %v797_v29, %v795_v28  ;;  %v799_v32 = vmul.f32 %v1927_v30, %v2272_v45  ;;  %v1888_v26 = vld [vmem:[%s2539_s1 + $0x78] sm:$0xff]  }
 0x388   : > { %1769 = vmatprep.mubr.msk.bf16.mxu1 %vm471_vm0, %v804_v2  ;;  %v805_v33 = vpack.c.bf16 %v801_v31, %v799_v32  ;;  %v1890_v31 = vld [vmem:[%s2539_s1 + $0x88] sm:$0xff]  }
 0x38d   : > { %1770 = vmatmul.mubr.msk.bf16.gmra.mrb[12].mxu1 %vm471_vm0, %v805_v33 }
 0x38e   : > { %1787 = vmatprep.mubr.msk.bf16.mxu1 %vm1004_vm2, %v1887_v14 }
 0x458   : > { %v2306_v21 = vpop.f32.mrb[8].mxu1 }
 0x459   : > { %v2308_v34 = vpop.f32.mrb[9].mxu1 }
 0x45a   : > { %883 = vadd.xlane.f32.xlu0 %v2308_v34  ;;  %v2311_v35 = vpop.f32.mrb[10].mxu1 }
 0x45b   : > { %v1123_v36 = vpack.c.bf16 %v2311_v35, %v2306_v21  ;;  %v2315_v37 = vpop.f32.mrb[11].mxu1 }
 0x45c   : > { %v1122_v38 = vpack.c.bf16 %v2315_v37, %v2308_v34  ;;  %885 = vadd.xlane.f32.xlu1 %v2315_v37 }
 0x45e   : > { %887 = vadd.xlane.f32.xlu0 %v2306_v21 }
 0x460   : > { %v2321_v39 = vpop.f32.mrb[12].mxu1 }
 0x461   : > { %v2323_v40 = vpop.f32.mrb[13].mxu1 }
 0x462   : > { %889 = vadd.xlane.f32.xlu0 %v2311_v35  ;;  %891 = vadd.xlane.f32.xlu1 %v2323_v40  ;;  %v2327_v41 = vpop.f32.mrb[14].mxu1 }
 0x463   : > { %v1125_v44 = vpack.c.bf16 %v2327_v41, %v2321_v39  ;;  %v2331_v42 = vpop.f32.mrb[15].mxu1 }
 0x464   : > { %v1124_v45 = vpack.c.bf16 %v2331_v42, %v2323_v40 }
 0x466   : > { %895 = vadd.xlane.f32.xlu1 %v2321_v39  ;;  %893 = vadd.xlane.f32.xlu0 %v2331_v42 }
 0x46a   : > { %897 = vadd.xlane.f32.xlu0 %v2327_v41 }
 0x477   : > { %1132 = vperm.xlu1 %1872, %v1128_v47  }
 0x47b   : > { %1210 = vperm.xlu1 %1872, %v1200_v43  }
 0x47f   : > { %1215 = vperm.xlu1 %1872, %v1201_v48   ;;  %v1892_v48 = vld [vmem:[%s2539_s1 + $0x98] sm:$0xff]  }
 0x480   : > { %1137 = vperm.xlu0 %1871, %v1129_v49   ;;  %v1893_v49 = vld [vmem:[%s2539_s1 + $0xa0] sm:$0xff]  }
 0x483   : > { %1225 = vperm.xlu1 %1872, %v1203_v50   ;;  %v1894_v50 = vld [vmem:[%s2539_s1 + $0xa8] sm:$0xff]  }
 0x484   : > { %1220 = vperm.xlu0 %1871, %v1202_v51   ;;  %v978_v51 = vld [vmem:[%s2540_s2 + $0xf0] sm:$0xff] }
 0x487   : > { %1235 = vperm.xlu1 %1872, %v1205_v52  }
 0x488   : > { %1230 = vperm.xlu0 %1871, %v1204_v53   ;;  %v979_v53 = vld [vmem:[%s2540_s2 + $0xf8] sm:$0xff] }
 0x4e7   : > { %v884_v54 = vpop.xlane.xlu0 %883 }
 0x4e8   : > { %v900_v57 = vmul.f32 0.0078125, %v884_v54 }
 0x4e9   : > { %v886_v55 = vpop.xlane.xlu1 %885 }
 0x4ea   : > { %v901_v58 = vmul.f32 0.0078125, %v886_v55 }
 0x4eb   : > { %v888_v59 = vpop.xlane.xlu0 %887 }
 0x4ec   : > { %v908_v60 = vpack.c.bf16 %v901_v58, %v900_v57  ;;  %v902_v62 = vmul.f32 0.0078125, %v888_v59  ;;  %v976_v57 = vld [vmem:[%s2540_s2 + $0xe0] sm:$0xff] }
 0x4ee   : > { %1774 = vmatpush3.bf16.msra.mxu0 %v908_v60 }
 0x4ef   : > { %v890_v56 = vpop.xlane.xlu0 %889  ;;  %v892_v61 = vpop.xlane.xlu1 %891  ;;  %1775 = vmatprep.subr.bf16.mxu0 %v2037_v46 }
 0x4f0   : > { %v903_v63 = vmul.f32 0.0078125, %v890_v56  ;;  %v904_v4 = vmul.f32 0.0078125, %v892_v61  ;;  %v977_v56 = vld [vmem:[%s2540_s2 + $0xe8] sm:$0xff] }
 0x4f2   : > { %v909_v0 = vpack.c.bf16 %v903_v63, %v902_v62 }
 0x4f3   : > { %v894_v1 = vpop.xlane.xlu0 %893  ;;  %v896_v6 = vpop.xlane.xlu1 %895 }
 0x4f4   : > { %v905_v5 = vmul.f32 0.0078125, %v894_v1  ;;  %1776 = vmatpush3.bf16.msra.mxu0 %v909_v0  ;;  %v906_v9 = vmul.f32 0.0078125, %v896_v6  ;;  %v1206_v0 = vld [vmem:[%s2540_s2 + $0x150] sm:$0xff]  ;;  %v980_v1 = vld [vmem:[%s2540_s2 + $0x100] sm:$0xff]  ;;  %v1207_v6 = vld [vmem:[%s2540_s2 + $0x158] sm:$0xff] }
 0x4f5   : > { %1777 = vmatprep.subr.bf16.mxu0 %v2037_v46 }
 0x4f6   : > { %v910_v7 = vpack.c.bf16 %v905_v5, %v904_v4 }
 0x4f7   : > { %v898_v8 = vpop.xlane.xlu0 %897  ;;  %v1133_v28 = vpop.permute.xlu1 %1132 }
 0x4f8   : > { %v907_v10 = vmul.f32 0.0078125, %v898_v8  ;;  %1778 = vmatpush3.bf16.msra.mxu0 %v910_v7 }
 0x4f9   : > { %1779 = vmatprep.subr.bf16.mxu0 %v2037_v46 }
 0x4fa   : > { %v911_v11 = vpack.c.bf16 %v907_v10, %v906_v9  ;;  %v981_v9 = vld [vmem:[%s2540_s2 + $0x108] sm:$0xff]  ;;  %v982_v10 = vld [vmem:[%s2540_s2 + $0x110] sm:$0xff] }
 0x4fc   : > { %1780 = vmatpush3.bf16.msra.mxu0 %v911_v11 }
 0x4fd   : > { %1795 = vmatprep.subr.bf16.mxu0 %v2037_v46 }
 0x4ff   : > { %1782 = vmatmul.mubr.msk.bf16.vlgmr.msra.gmra.mrb[24].mxu0 %vm471_vm0, %v1885_v12  ;;  %v1138_v32 = vpop.permute.xlu0 %1137  ;;  %v983_v12 = vld [vmem:[%s2540_s2 + $0x118] sm:$0xff] }
 0x500   : > { %1796 = vmatpush3.bf16.msra.mxu0 %v1122_v38  ;;  %1803 = vmatprep.mubr.msk.bf16.mxu0 %vm2038_vm1, %v2037_v46 }
 0x501   : > { %1797 = vmatprep.subr.bf16.mxu0 %v2037_v46 }
 0x504   : > { %1798 = vmatpush3.bf16.msra.mxu0 %v1123_v36  ;;  %v1891_v36 = vld [vmem:[%s2539_s1 + $0x90] sm:$0xff]  }
 0x505   : > { %1799 = vmatprep.subr.bf16.mxu0 %v2037_v46 }
 0x508   : > { %1800 = vmatpush3.bf16.msra.mxu0 %v1124_v45 }
 0x509   : > { %1801 = vmatprep.subr.bf16.mxu0 %v2037_v46 }
 0x50c   : > { %1802 = vmatpush3.bf16.msra.mxu0 %v1125_v44 }
 0x50d   : > { %1817 = vmatprep.subr.bf16.mxu0 %v2037_v46 }
 0x50f   : > { %1804 = vmatmul.mubr.msk.bf16.vlgmr.msra.gmra.mrb[28].mxu0 %vm471_vm0, %v1886_v13 }
 0x510   : > { %1825 = vmatprep.mubr.msk.bf16.mxu0 %vm2038_vm1, %v2037_v46 }
 0x5d2   : > { %v958_v16 = vpop.f32.mrb[24].mxu0 }
 0x5d3   : > { %v959_v18 = vadd.f32 %v958_v16, %v914_v15  ;;  %v1783_v19 = vpop.f32.mrb[25].mxu0 }
 0x5d4   : > { %v961_v20 = vpop.f32.mrb[26].mxu0  ;;  %v1495_v19 = vld [vmem:[%s2540_s2 + $0x160] sm:$0x1] }
 0x5d5   : > { %v962_v3 = vadd.f32 %v961_v20, %v915_v17  ;;  %v1784_v22 = vpop.f32.mrb[27].mxu0  ;;  %v965_v23 = vmax.f32 %v959_v18, 0.0 }
 0x5d7   : > { %v966_v24 = vmax.f32 %v962_v3, 0.0 }
 0x5d9   : > { %v967_v25 = vpack.c.bf16 %v966_v24, %v965_v23  ;;  %v1211_v24 = vpop.permute.xlu1 %1210 }
 0x5db   : > { %1785 = vmatprep.subr.bf16.mxu1 %v967_v25 }
 0x5dc   : > { %1786 = vmatpush3.bf16.msra.mxu1 %v967_v25 }
 0x5dd   : > { %v1216_v25 = vpop.permute.xlu1 %1215 }
 0x5df   : > { %1788 = vmatmul.mubr.msk.bf16.vlgmr.msra.gmra.mrb[16].mxu1 %vm1004_vm2, %v1888_v26  ;;  %v1221_v26 = vpop.permute.xlu0 %1220 }
 0x5e0   : > { %1791 = vmatprep.mubr.msk.bf16.mxu1 %vm1004_vm2, %v1889_v27 }
 0x5e1   : > { %v1226_v27 = vpop.permute.xlu1 %1225 }
 0x5e2   : > { %v1182_v29 = vpop.f32.mrb[28].mxu0 }
 0x5e3   : > { %v1183_v30 = vadd.f32 %v1182_v29, %v1133_v28  ;;  %v1805_v2 = vpop.f32.mrb[29].mxu0  ;;  %v1231_v28 = vpop.permute.xlu0 %1230 }
 0x5e4   : > { %v1185_v33 = vpop.f32.mrb[30].mxu0 }
 0x5e5   : > { %v1186_v38 = vadd.f32 %v1185_v33, %v1138_v32  ;;  %v1806_v44 = vpop.f32.mrb[31].mxu0  ;;  %v1189_v45 = vmax.f32 %v1183_v30, 0.0  ;;  %v1236_v29 = vpop.permute.xlu1 %1235 }
 0x5e7   : > { %v1190_v47 = vmax.f32 %v1186_v38, 0.0  ;;  %1792 = vmatmul.mubr.msk.bf16.gmra.mrb[20].mxu1 %vm1004_vm2, %v1890_v31 }
 0x5e8   : > { %1809 = vmatprep.mubr.msk.bf16.mxu1 %vm1004_vm2, %v1891_v36 }
 0x5e9   : > { %v1191_v43 = vpack.c.bf16 %v1190_v47, %v1189_v45 }
 0x5eb   : > { %1807 = vmatprep.subr.bf16.mxu1 %v1191_v43 }
 0x5ec   : > { %1808 = vmatpush3.bf16.msra.mxu1 %v1191_v43 }
 0x5ef   : > { %1810 = vmatmul.mubr.msk.bf16.vlgmr.msra.gmra.mrb[24].mxu1 %vm1004_vm2, %v1892_v48 }
 0x5f0   : > { %1813 = vmatprep.mubr.msk.bf16.mxu1 %vm1004_vm2, %v1893_v49 }
 0x5f7   : > { %1814 = vmatmul.mubr.msk.bf16.gmra.mrb[28].mxu1 %vm1004_vm2, %v1894_v50 }
 0x6b2   : > { %v1789_v52 = vpop.f32.mrb[16].mxu1 }
 0x6b3   : > { %v1060_v54 = vadd.f32 %v1789_v52, %v978_v51  ;;  %v1051_v55 = vpop.f32.mrb[17].mxu1 }
 0x6b4   : > { %v1790_v58 = vpop.f32.mrb[18].mxu1  ;;  %v1052_v61 = vadd.f32 %v1051_v55, %v976_v57 }
 0x6b5   : > { %v1063_v59 = vadd.f32 %v1790_v58, %v979_v53  ;;  %1094 = vperm.xlu0 %1871, %v1060_v54   ;;  %v1054_v60 = vpop.f32.mrb[19].mxu1 }
 0x6b6   : > { %v1055_v62 = vadd.f32 %v1054_v60, %v977_v56 }
 0x6b7   : > { %1099 = vperm.xlu1 %1872, %v1063_v59  }
 0x6b9   : > { %1084 = vperm.xlu0 %1871, %v1052_v61  }
 0x6ba   : > { %v1793_v63 = vpop.f32.mrb[20].mxu1 }
 0x6bb   : > { %1089 = vperm.xlu1 %1872, %v1055_v62   ;;  %v1067_v4 = vpop.f32.mrb[21].mxu1  ;;  %v1076_v14 = vadd.f32 %v1793_v63, %v982_v10 }
 0x6bc   : > { %v1794_v5 = vpop.f32.mrb[22].mxu1  ;;  %v1068_v7 = vadd.f32 %v1067_v4, %v980_v1 }
 0x6bd   : > { %1240 = vperm.xlu0 %1871, %v1206_v0   ;;  %v1070_v8 = vpop.f32.mrb[23].mxu1  ;;  %v1079_v17 = vadd.f32 %v1794_v5, %v983_v12 }
 0x6be   : > { %v1071_v11 = vadd.f32 %v1070_v8, %v981_v9 }
 0x6bf   : > { %1245 = vperm.xlu1 %1872, %v1207_v6  }
 0x6c1   : > { %1104 = vperm.xlu0 %1871, %v1068_v7  }
 0x6c2   : > { %v1811_v13 = vpop.f32.mrb[24].mxu1 }
 0x6c3   : > { %1109 = vperm.xlu1 %1872, %v1071_v11   ;;  %v1314_v15 = vpop.f32.mrb[25].mxu1  ;;  %v1323_v30 = vadd.f32 %v1811_v13, %v1221_v26  ;;  %v1964_v26 = vld [vmem:[%s2124_s8 + $0x10] sm:$0xff] }
 0x6c4   : > { %v1812_v16 = vpop.f32.mrb[26].mxu1  ;;  %v1315_v36 = vadd.f32 %v1314_v15, %v1211_v24 }
 0x6c5   : > { %1114 = vperm.xlu0 %1871, %v1076_v14   ;;  %v1317_v18 = vpop.f32.mrb[27].mxu1  ;;  %v1326_v31 = vadd.f32 %v1812_v16, %v1226_v27 }
 0x6c6   : > { %v1318_v47 = vadd.f32 %v1317_v18, %v1216_v25 }
 0x6c7   : > { %1119 = vperm.xlu1 %1872, %v1079_v17  }
 0x6c9   : > { %1498 = vperm.xlu0 %1871, %v1495_v19  }
 0x6ca   : > { %v1815_v20 = vpop.f32.mrb[28].mxu1 }
 0x6cb   : > { %v1330_v3 = vpop.f32.mrb[29].mxu1 }
 0x6cc   : > { %v1816_v22 = vpop.f32.mrb[30].mxu1  ;;  %v1331_v55 = vadd.f32 %v1330_v3, %v1231_v28 }
 0x6cd   : > { %v1333_v23 = vpop.f32.mrb[31].mxu1 }
 0x6ce   : > { %v1334_v58 = vadd.f32 %v1333_v23, %v1236_v29 }
 0x734   : > { %v1095_v2 = vpop.permute.xlu0 %1094 }
 0x735   : > { %v1347_v32 = vadd.f32 %v1323_v30, %v1095_v2 }
 0x736   : > { %v1100_v33 = vpop.permute.xlu1 %1099 }
 0x737   : > { %v1640_v38 = vmul.f32 -1.442695, %v1347_v32  ;;  %v1348_v44 = vadd.f32 %v1326_v31, %v1100_v33  ;;  %v1965_v31 = vld [vmem:[%s2124_s8 + $0x18] sm:$0xff] }
 0x738   : > { %v1085_v45 = vpop.permute.xlu0 %1084 }
 0x739   : > { %1928 = vpow2.f32 %v1640_v38  ;;  %v1641_v43 = vmul.f32 -1.442695, %v1348_v44  ;;  %v1345_v48 = vadd.f32 %v1315_v36, %v1085_v45  ;;  %v1966_v44 = vld [vmem:[%s2124_s8] sm:$0xff] }
 0x73a   : > { %v1090_v49 = vpop.permute.xlu1 %1089 }
 0x73b   : > { %1930 = vpow2.f32 %v1641_v43  ;;  %v1638_v50 = vmul.f32 -1.442695, %v1345_v48  ;;  %v1346_v51 = vadd.f32 %v1318_v47, %v1090_v49  ;;  %v1967_v43 = vld [vmem:[%s2124_s8 + $0x8] sm:$0xff] }
 0x73c   : > { %v1241_v52 = vpop.permute.xlu0 %1240 }
 0x73d   : > { %1932 = vpow2.f32 %v1638_v50  ;;  %v1639_v53 = vmul.f32 -1.442695, %v1346_v51  ;;  %v1339_v61 = vadd.f32 %v1815_v20, %v1241_v52 }
 0x73e   : > { %v1246_v54 = vpop.permute.xlu1 %1245 }
 0x73f   : > { %1934 = vpow2.f32 %v1639_v53  ;;  %v1342_v5 = vadd.f32 %v1816_v22, %v1246_v54 }
 0x740   : > { %v1105_v57 = vpop.permute.xlu0 %1104 }
 0x741   : > { %v1349_v59 = vadd.f32 %v1331_v55, %v1105_v57 }
 0x742   : > { %v1110_v60 = vpop.permute.xlu1 %1109 }
 0x743   : > { %v1929_v56 = vpop.eup %1928  ;;  %v1642_v62 = vmul.f32 -1.442695, %v1349_v59  ;;  %v1350_v63 = vadd.f32 %v1334_v58, %v1110_v60 }
 0x744   : > { %v1379_v0 = vadd.f32 1.0, %v1929_v56  ;;  %v1115_v1 = vpop.permute.xlu0 %1114 }
 0x745   : > { %v1931_v4 = vpop.eup %1930  ;;  %1936 = vpow2.f32 %v1642_v62  ;;  %v1643_v6 = vmul.f32 -1.442695, %v1350_v63  ;;  %v1351_v7 = vadd.f32 %v1339_v61, %v1115_v1  ;;  %v1968_v61 = vld [vmem:[%s2124_s8 + $0x20] sm:$0xff]  ;;  %v1969_v1 = vld [vmem:[%s2124_s8 + $0x28] sm:$0xff] }
 0x746   : > { %1938 = vrcp.f32 %v1379_v0  ;;  %v1380_v8 = vadd.f32 1.0, %v1931_v4  ;;  %v1120_v9 = vpop.permute.xlu1 %1119 }
 0x747   : > { %v1933_v10 = vpop.eup %1932  ;;  %1940 = vpow2.f32 %v1643_v6  ;;  %v1644_v11 = vmul.f32 -1.442695, %v1351_v7  ;;  %v1352_v12 = vadd.f32 %v1342_v5, %v1120_v9 }
 0x748   : > { %1942 = vrcp.f32 %v1380_v8  ;;  %v1377_v13 = vadd.f32 1.0, %v1933_v10  ;;  %v1970_v10 = vld [vmem:[%s2124_s8 + $0x30] sm:$0xff] }
 0x749   : > { %v1935_v14 = vpop.eup %1934  ;;  %1944 = vpow2.f32 %v1644_v11  ;;  %v1645_v15 = vmul.f32 -1.442695, %v1352_v12  ;;  %v1971_v12 = vld [vmem:[%s2124_s8 + $0x38] sm:$0xff] }
 0x74a   : > { %1946 = vrcp.f32 %v1377_v13  ;;  %v1378_v16 = vadd.f32 1.0, %v1935_v14 }
 0x74b   : > { %1948 = vpow2.f32 %v1645_v15 }
 0x74c   : > { %1950 = vrcp.f32 %v1378_v16 }
 0x74f   : > { %v1937_v17 = vpop.eup %1936 }
 0x750   : > { %v1939_v18 = vpop.eup %1938  ;;  %v1381_v19 = vadd.f32 1.0, %v1937_v17 }
 0x751   : > { %v1941_v20 = vpop.eup %1940  ;;  %v1403_v3 = vmul.f32 %v1939_v18, %v2306_v21 }
 0x752   : > { %v1943_v22 = vpop.eup %1942  ;;  %1952 = vrcp.f32 %v1381_v19  ;;  %v1382_v23 = vadd.f32 1.0, %v1941_v20 }
 0x753   : > { %v1945_v24 = vpop.eup %1944  ;;  %v1404_v25 = vmul.f32 %v1943_v22, %v2311_v35  ;;  %v1411_v27 = vmul.f32 %v1964_v26, %v1403_v3  ;;  %v1895_v22 = vld [vmem:[%s2539_s1 + $0xb0] sm:$0xff]  }
 0x754   : > { %v1947_v28 = vpop.eup %1946  ;;  %1954 = vrcp.f32 %v1382_v23  ;;  %v1383_v29 = vadd.f32 1.0, %v1945_v24  ;;  %v1499_v23 = vpop.permute.xlu0 %1498 }
 0x755   : > { %v1949_v30 = vpop.eup %1948  ;;  %v1401_v2 = vmul.f32 %v1947_v28, %v2308_v34  ;;  %v1412_v32 = vmul.f32 %v1965_v31, %v1404_v25  ;;  %v1419_v33 = vsub.f32 1.0, %v1411_v27 }
 0x756   : > { %v1951_v21 = vpop.eup %1950  ;;  %1956 = vrcp.f32 %v1383_v29  ;;  %v1384_v36 = vadd.f32 1.0, %v1949_v30 }
 0x757   : > { %v1402_v38 = vmul.f32 %v1951_v21, %v2315_v37  ;;  %v1409_v45 = vmul.f32 %v1966_v44, %v1401_v2  ;;  %v1420_v35 = vsub.f32 1.0, %v1412_v32  ;;  %v1427_v47 = vadd.f32 %v1419_v33, %v1411_v27 }
 0x758   : > { %1958 = vrcp.f32 %v1384_v36 }
 0x759   : > { %v1410_v48 = vmul.f32 %v1967_v43, %v1402_v38  ;;  %v1417_v49 = vsub.f32 1.0, %v1409_v45  ;;  %v1428_v50 = vadd.f32 %v1420_v35, %v1412_v32  ;;  %v1435_v52 = vmul.f32 0.5, %v1427_v47 }
 0x75b   : > { %v1418_v51 = vsub.f32 1.0, %v1410_v48  ;;  %v1425_v34 = vadd.f32 %v1417_v49, %v1409_v45  ;;  %v1436_v53 = vmul.f32 0.5, %v1428_v50 }
 0x75c   : > { %v1953_v54 = vpop.eup %1952 }
 0x75d   : > { %v1426_v55 = vadd.f32 %v1418_v51, %v1410_v48  ;;  %v1444_v57 = vpack.c.bf16 %v1436_v53, %v1435_v52  ;;  %v1405_v37 = vmul.f32 %v1953_v54, %v2323_v40  ;;  %v1433_v59 = vmul.f32 0.5, %v1425_v34 }
 0x75e   : > { %v1955_v58 = vpop.eup %1954 }
 0x75f   : > { %v1434_v60 = vmul.f32 0.5, %v1426_v55  ;;  %v1406_v56 = vmul.f32 %v1955_v58, %v2331_v42  ;;  %v1413_v62 = vmul.f32 %v1968_v61, %v1405_v37 }
 0x760   : > { %v1957_v63 = vpop.eup %1956 }
 0x761   : > { %v1443_v0 = vpack.c.bf16 %v1434_v60, %v1433_v59  ;;  %v1414_v4 = vmul.f32 %v1969_v1, %v1406_v56  ;;  %v1421_v5 = vsub.f32 1.0, %v1413_v62  ;;  %v1407_v6 = vmul.f32 %v1957_v63, %v2321_v39 }
 0x762   : > { %v1959_v7 = vpop.eup %1958 }
 0x763   : > { %1818 = vmatpush3.bf16.msra.mxu0 %v1443_v0  ;;  %v1422_v8 = vsub.f32 1.0, %v1414_v4  ;;  %v1429_v40 = vadd.f32 %v1421_v5, %v1413_v62  ;;  %v1408_v9 = vmul.f32 %v1959_v7, %v2327_v41  ;;  %v1415_v11 = vmul.f32 %v1970_v10, %v1407_v6 }
 0x764   : > { %1819 = vmatprep.subr.bf16.mxu0 %v2037_v46 }
 0x765   : > { %v1430_v42 = vadd.f32 %v1422_v8, %v1414_v4  ;;  %v1416_v13 = vmul.f32 %v1971_v12, %v1408_v9  ;;  %v1423_v14 = vsub.f32 1.0, %v1415_v11  ;;  %v1437_v15 = vmul.f32 0.5, %v1429_v40 }
 0x767   : > { %1820 = vmatpush3.bf16.msra.mxu0 %v1444_v57  ;;  %v1438_v16 = vmul.f32 0.5, %v1430_v42  ;;  %v1424_v17 = vsub.f32 1.0, %v1416_v13  ;;  %v1431_v18 = vadd.f32 %v1423_v14, %v1415_v11 }
 0x768   : > { %1821 = vmatprep.subr.bf16.mxu0 %v2037_v46 }
 0x769   : > { %v1445_v39 = vpack.c.bf16 %v1438_v16, %v1437_v15  ;;  %v1432_v19 = vadd.f32 %v1424_v17, %v1416_v13  ;;  %v1439_v20 = vmul.f32 0.5, %v1431_v18 }
 0x76b   : > { %1822 = vmatpush3.bf16.msra.mxu0 %v1445_v39  ;;  %v1440_v41 = vmul.f32 0.5, %v1432_v19 }
 0x76c   : > { %1823 = vmatprep.subr.bf16.mxu0 %v2037_v46 }
 0x76d   : > { %v1446_v3 = vpack.c.bf16 %v1440_v41, %v1439_v20 }
 0x76f   : > { %1824 = vmatpush3.bf16.msra.mxu0 %v1446_v3 }
 0x772   : > { %1826 = vmatmul.mubr.msk.bf16.vlgmr.msra.gmra.mrb[32].mxu0 %vm471_vm0, %v1895_v22 }
 0x845   : > { %v1489_v24 = vpop.f32.mrb[32].mxu0 }
 0x846   : > { %v1501_v25 = vadd.f32 %v1499_v23, %v1489_v24  ;;  %v1827_v26 = vpop.f32.mrb[33].mxu0 }
 0x847   : > { %v1492_v27 = vpop.f32.mrb[34].mxu0 }
 0x848   : > { %v1648_v28 = vmul.f32 -1.442695, %v1501_v25  ;;  %v1828_v29 = vpop.f32.mrb[35].mxu0 }
 0x84a   : > { %1960 = vpow2.f32 %v1648_v28 }
 0x854   : > { %v1961_v46 = vpop.eup %1960 }
 0x855   : > { %v1505_v30 = vadd.f32 1.0, %v1961_v46 }
 0x857   : > { %1962 = vrcp.f32 %v1505_v30 }
 0x861   : > { %v1963_v2 = vpop.eup %1962 }
 0x862   : > { %1508 = vst [vmem:[%s229_s24] sm:$0x1] %v1963_v2 }
 0x863   : > { %1985 = shalt.err (!%p1982_p5)
}
 0x864   : > { %s1986_s4 = scalar_lea.hbm %s2494_s28, 16  ;;  %s1990_s10 = scalar_lea.hbm %s2541_s3, 32 }
 0x865   : > { %p1987_p7 = scmp.ne.s32.totalorder %s2494_s28, %s1986_s4  ;;  %p1991_p12 = scmp.lt.u32.totalorder %s2494_s28, %s2541_s3 }
 0x866   : > { %p1992_p13 = scmp.lt.u32.totalorder %s1990_s10, %s1986_s4  ;;  %p1994_p1 = scmp.lt.u32.totalorder %s1986_s4, %s2494_s28 }
 0x867   : > { %p1988_p10 = pnand %p1987_p7, %p2098_p6 }
 0x868   : > { %p1993_p0 = por %p1992_p13, %p1991_p12 }
 0x869   : > { %p1989_p11 = pneg %p1988_p10 }
 0x86a   : > { %p1995_p2 = por %p1994_p1, %p1993_p0 }
 0x86c   : > { %p1996_p3 = pnand %p1995_p2, %p1989_p11 }
 0x86e   : > { %1999 = shalt.err (!%p1996_p3)
}
 0x86f   : > { %1829 = dma.vmem_to_hbm [thread:$0]  (%p2098_p6), %s2496_s25, 16, %s2494_s28, %s1510_s29  }
 0x870 PF: > { %s1534_s19 = sand.u32 1, %s2022_s12   ;;  %p1832_p4 = pnand %p1585_p9, %p2102_p8 }
 0x871   : > { %s1535_s8 = scalar_lea.sflag [#allocation4], %s1534_s19 }
 0x872   : > { %2017 = dma.done.wait (!%p1832_p4), %s1535_s8, 16  }
 0x873   : > { %2019 = vsyncadd (!%p1832_p4), %s1535_s8, 4294967280  ;;  %p13_p5 = scmp.ge.s32.totalorder %s2083_s18, 4   ;;  %s2544_s12 = smov %s2026_s13 }
 0x874   : > { %s2545_s13 = smov %s2030_s14  ;;  %s2546_s14 = smov %s2096_s21 }
 0x875   : > { %s2547_s15 = smov %s2083_s18  ;;  %15 = sbr.rel (!%p13_p5) target bundleno = 3 (0x3), region = 110 }
 0x87c   :  { %1539 = vsyncpa [#allocation4], 1 }
 0x87d   :  { %1541 = vsyncpa [#allocation4 + $0x1], 1 }

</bundles_post_ra>
